<compile_context>
chip_gen: v6e
topology: v6e:2x2x1
jax: 0.10.0
libtpu: 0.0.40
codegen_flags: <defaults>
</compile_context>

<pallas_src>
import functools

import jax
import jax.numpy as jnp
from jax.experimental import pallas as pl
from jax.experimental.pallas import tpu as pltpu

_SQRT_HALF = 0.7071067811865476  # 1/sqrt(2), precomputed (no per-element divide)


def _gelu_exact_f32(x):
    # PyTorch nn.GELU() default = exact erf formulation, computed in f32.
    return 0.5 * x * (1.0 + jax.lax.erf(x * jnp.float32(_SQRT_HALF)))


def _round_up(x, m):
    return ((x + m - 1) // m) * m


def _vmem_capacity_bytes():
    """Trace-time VMEM query; conservative (v7x per-TC) fallback if unavailable."""
    try:
        info = pltpu.get_tpu_info()
        cap = getattr(info, "vmem_capacity_bytes", None)
        if cap:
            return int(cap)
    except Exception:
        pass
    return 64 * 1024 * 1024


def simple_mlp_kernel(x_ref, eproj_ref, w1_ref, b1_ref, w2_ref, b2_ref,
                      w3_ref, b3_ref, o_ref, h2_acc):
    """Grid = (batch tile b [parallel], hidden-4M tile k [arbitrary, innermost])."""
    k = pl.program_id(1)

    @pl.when(k == 0)
    def _init():
        h2_acc[...] = jnp.zeros_like(h2_acc)

    # Layer 1, one tile of the 4M hidden dim: bf16 MXU matmul, f32 accumulation,
    # plus the gathered bf16 embedding projection and the f32 b1 slice; GELU f32.
    h1 = jnp.dot(x_ref[...], w1_ref[...], preferred_element_type=jnp.float32)
    h1 = _gelu_exact_f32(h1 + eproj_ref[...].astype(jnp.float32) + b1_ref[...])

    # Layer 2 partial product, accumulated across the hidden-K grid axis in a
    # resident f32 VMEM scratch (never round-trips through HBM).
    h2_acc[...] += jnp.dot(h1.astype(w2_ref.dtype), w2_ref[...],
                           preferred_element_type=jnp.float32)

    @pl.when(k == pl.num_programs(1) - 1)
    def _finalize():
        h2 = _gelu_exact_f32(h2_acc[...] + b2_ref[...])
        out = jnp.dot(h2.astype(w3_ref.dtype), w3_ref[...],
                      preferred_element_type=jnp.float32) + b3_ref[...]
        o_ref[...] = out.astype(o_ref.dtype)


def prepare_params(params, M, *, compute_dtype=jnp.bfloat16):
    """One-time weight prep (pad to 128-multiples, cast to bf16, fold concat).

    Call once per model; the per-step forward only gathers the embedding table
    and pads the activations.  Biases stay f32 for exact adds in-kernel.
    """
    H1, H2 = 4 * M, 2 * M
    Mp, H1p, H2p = _round_up(M, 128), _round_up(H1, 128), _round_up(H2, 128)

    def pad2(a, rows, cols):
        return jnp.pad(a, ((0, rows - a.shape[0]), (0, cols - a.shape[1])))

    w1 = params["w1"]                                           # [M+T, 4M]
    # concat fold: cat([x, e]) @ W1 == x @ W1[:M] + e @ W1[M:]  (b1 kept separate).
    etab = (params["time_embed"] @ w1[M:]).astype(compute_dtype)  # [T, 4M] bf16

    return {
        "w1a": pad2(w1[:M], Mp, H1p).astype(compute_dtype),     # [Mp, H1p] bf16
        "w2": pad2(params["w2"], H1p, H2p).astype(compute_dtype),  # [H1p,H2p] bf16
        "w3": pad2(params["w3"], H2p, Mp).astype(compute_dtype),   # [H2p,Mp]  bf16
        "b1": pad2(params["b1"][None, :], 1, H1p),              # [1, H1p] f32
        "b2": pad2(params["b2"][None, :], 1, H2p),              # [1, H2p] f32
        "b3": pad2(params["b3"][None, :], 1, Mp),               # [1, Mp]  f32
        "eproj_table": jnp.pad(etab, ((0, 0), (0, H1p - etab.shape[1]))),  # [T, H1p]
    }


def simple_mlp_forward(prepared, x_t, t, *, compute_dtype=jnp.bfloat16,
                       use_pipeline_mode=True):
    """prepared: output of prepare_params. x_t: [B, M] f32, t: [B] int32 -> [B, M] f32."""
    B, M = x_t.shape
    w1a, w2, w3 = prepared["w1a"], prepared["w2"], prepared["w3"]
    Mp, H1p = w1a.shape
    H2p = w2.shape[1]

    # --- Generation-gated tiling / VMEM budget -------------------------------
    vmem_cap = _vmem_capacity_bytes()
    big_vmem = vmem_cap >= 100 * 1024 * 1024             # v5e/v6e 128 MiB vs v7x 64 MiB
    vmem_limit = int(min(max(vmem_cap - 16 * 1024 * 1024, 32 * 1024 * 1024),
                         112 * 1024 * 1024))

    # Batch tile: parallel axis (megacore); multiple of 16 so bf16 operands stay
    # vreg-dense (2 rows / sublane).
    TB = min(256 if big_vmem else 128, _round_up(B, 16))
    Bp = _round_up(B, TB)

    # 4M hidden-K tile (innermost, 'arbitrary').  Keep large (>=512 where it
    # divides) so the h2_acc read-add-write stays a small fraction of the vst slot.
    if big_vmem and H1p % 1024 == 0:
        TH1 = 1024
    elif H1p % 512 == 0:
        TH1 = 512
    elif H1p % 256 == 0:
        TH1 = 256
    else:
        TH1 = 128

    # --- Cheap per-call glue (no weight re-pad / re-cast here) ---------------
    eproj = prepared["eproj_table"][t]                    # [B, H1p] bf16 gather

    def padb(a, rows, cols):
        return jnp.pad(a, ((0, rows - a.shape[0]), (0, cols - a.shape[1])))

    x_p = padb(x_t, Bp, Mp).astype(compute_dtype)         # [Bp, Mp]  bf16
    eproj_p = padb(eproj, Bp, H1p)                        # [Bp, H1p] bf16

    def spec(shape, index_map, buffers=None):
        if buffers is not None and use_pipeline_mode:
            return pl.BlockSpec(shape, index_map, pipeline_mode=pl.Buffered(buffers))
        return pl.BlockSpec(shape, index_map)

    # Deeper prefetch for the big per-step weight streams only where VMEM allows.
    weight_buffers = 3 if big_vmem else None

    grid = (Bp // TB, H1p // TH1)
    n_btiles = grid[0]

    flops = 2 * Bp * (Mp * H1p + H1p * H2p + H2p * Mp)
    bytes_accessed = (
        x_p.size * 2 + eproj_p.size * 2
        + (w1a.size + w2.size) * 2 * n_btiles             # re-streamed per batch tile
        + w3.size * 2
        + (prepared["b1"].size + prepared["b2"].size + prepared["b3"].size) * 4
        + Bp * Mp * 4
    )

    out_p = pl.pallas_call(
        simple_mlp_kernel,
        out_shape=jax.ShapeDtypeStruct((Bp, Mp), x_t.dtype),
        grid=grid,
        in_specs=[
            spec((TB, Mp), lambda b, k: (b, 0)),                       # x tile
            spec((TB, TH1), lambda b, k: (b, k)),                      # embed proj (bf16)
            spec((Mp, TH1), lambda b, k: (0, k), weight_buffers),      # W1a tile
            spec((1, TH1), lambda b, k: (0, k)),                       # b1 slice
            spec((TH1, H2p), lambda b, k: (k, 0), weight_buffers),     # W2 tile
            spec((1, H2p), lambda b, k: (0, 0), 1),                    # b2 (invariant)
            spec((H2p, Mp), lambda b, k: (0, 0), 1),                   # W3 (invariant)
            spec((1, Mp), lambda b, k: (0, 0), 1),                     # b3 (invariant)
        ],
        out_specs=pl.BlockSpec((TB, Mp), lambda b, k: (b, 0)),
        scratch_shapes=[pltpu.VMEM((TB, H2p), jnp.float32)],           # layer-2 acc
        compiler_params=pltpu.CompilerParams(
            dimension_semantics=("parallel", "arbitrary"),
            vmem_limit_bytes=vmem_limit,
        ),
        cost_estimate=pl.CostEstimate(
            flops=flops,
            transcendentals=Bp * (H1p + H2p),
            bytes_accessed=bytes_accessed,
        ),
    )(x_p, eproj_p, w1a, prepared["b1"], w2, prepared["b2"], w3, prepared["b3"])

    return out_p[:B, :M]


def init_params(key, M, timesteps):
    """Deterministic synthetic init (shapes match the PyTorch module)."""
    ks = jax.random.split(key, 7)
    d_in, d_h1, d_h2 = M + timesteps, 4 * M, 2 * M
    return {
        "time_embed": jax.random.normal(ks[0], (timesteps, timesteps), jnp.float32),
        "w1": jax.random.normal(ks[1], (d_in, d_h1), jnp.float32) / jnp.sqrt(d_in),
        "b1": jax.random.normal(ks[2], (d_h1,), jnp.float32) * 0.01,
        "w2": jax.random.normal(ks[3], (d_h1, d_h2), jnp.float32) / jnp.sqrt(d_h1),
        "b2": jax.random.normal(ks[4], (d_h2,), jnp.float32) * 0.01,
        "w3": jax.random.normal(ks[5], (d_h2, M), jnp.float32) / jnp.sqrt(d_h2),
        "b3": jax.random.normal(ks[6], (M,), jnp.float32) * 0.01,
    }


def reference_forward(params, x_t, t):
    """Pure-f32 JAX reference mirroring the PyTorch forward."""
    e = params["time_embed"][t]
    x = jnp.concatenate([x_t, e], axis=1)
    h = jax.nn.gelu(x @ params["w1"] + params["b1"], approximate=False)
    h = jax.nn.gelu(h @ params["w2"] + params["b2"], approximate=False)
    return h @ params["w3"] + params["b3"]


def matched_reference(params, x_t, t, compute_dtype=jnp.bfloat16):
    """Reference mirroring the kernel's bf16-operand / f32-accum arithmetic."""
    M = x_t.shape[1]
    cd = compute_dtype
    w1 = params["w1"]
    etab = (params["time_embed"] @ w1[M:]).astype(cd)          # bf16 table, like prepare_params
    h1 = jnp.dot(x_t.astype(cd), w1[:M].astype(cd),
                 preferred_element_type=jnp.float32)
    h1 = h1 + etab[t].astype(jnp.float32) + params["b1"][None, :]
    h1 = jax.nn.gelu(h1, approximate=False)
    h2 = jnp.dot(h1.astype(cd), params["w2"].astype(cd),
                 preferred_element_type=jnp.float32) + params["b2"]
    h2 = jax.nn.gelu(h2, approximate=False)
    return jnp.dot(h2.astype(cd), params["w3"].astype(cd),
                   preferred_element_type=jnp.float32) + params["b3"]


if __name__ == "__main__":
    M, timesteps, batch = 16, 8, 8

    key = jax.random.PRNGKey(0)
    k_params, k_x, k_t = jax.random.split(key, 3)

    params = init_params(k_params, M, timesteps)
    x_t = jax.random.normal(k_x, (batch, M), jnp.float32)
    t = jax.random.randint(k_t, (batch,), 0, timesteps, jnp.int32)

    # One-time weight prep (hoisted out of the per-step forward).
    prepared = prepare_params(params, M)

    def run(use_pipeline_mode):
        fwd = jax.jit(functools.partial(simple_mlp_forward,
                                        use_pipeline_mode=use_pipeline_mode))
        return jax.block_until_ready(fwd(prepared, x_t, t))

    try:
        out = run(True)
    except Exception:
        # Fallback for JAX versions without BlockSpec.pipeline_mode / pl.Buffered.
        out = run(False)

    assert out.shape == (batch, M)
    assert out.dtype == x_t.dtype

    # Tight check against a reference with matching bf16-operand arithmetic.
    ref_matched = matched_reference(params, x_t, t)
    assert jnp.allclose(out, ref_matched, atol=2e-3, rtol=2e-3)

    # Looser check against the pure-f32 PyTorch-semantics reference
    # (bf16 MXU operands / bf16 embed table introduce ~0.5% relative error).
    ref_f32 = reference_forward(params, x_t, t)
    assert jnp.allclose(out, ref_f32, atol=5e-2, rtol=5e-2)

    print("KERNEL_OK")
</pallas_src>

<mosaic_0001>
module attributes {stable_mosaic.version = 11 : i64} {
  func.func @simple_mlp_kernel(%arg0: i32, %arg1: i32, %arg2: memref<16x128xbf16, #tpu.memory_space<vmem>>, %arg3: memref<16x128xbf16, #tpu.memory_space<vmem>>, %arg4: memref<128x128xbf16, #tpu.memory_space<vmem>>, %arg5: memref<1x128xf32, #tpu.memory_space<vmem>>, %arg6: memref<128x128xbf16, #tpu.memory_space<vmem>>, %arg7: memref<1x128xf32, #tpu.memory_space<vmem>>, %arg8: memref<128x128xbf16, #tpu.memory_space<vmem>>, %arg9: memref<1x128xf32, #tpu.memory_space<vmem>>, %arg10: memref<16x128xf32, #tpu.memory_space<vmem>>, %arg11: memref<16x128xf32, #tpu.memory_space<vmem>>) attributes {dimension_semantics = [#tpu.dimension_semantics<parallel>, #tpu.dimension_semantics<arbitrary>], iteration_bounds = array<i64: 1, 1>, scalar_prefetch = 0 : i64, scratch_operands = 1 : i64, tpu.core_type = #tpu.core_type<tc>, window_params = [{transform_indices = @transform_0, window_bounds = array<i64: 16, 128>}, {transform_indices = @transform_1, window_bounds = array<i64: 16, 128>}, {transform_indices = @transform_2, window_bounds = array<i64: 128, 128>}, {transform_indices = @transform_3, window_bounds = array<i64: 1, 128>}, {transform_indices = @transform_4, window_bounds = array<i64: 128, 128>}, {pipeline_mode = #tpu.pipeline_mode<synchronous>, transform_indices = @transform_5, window_bounds = array<i64: 1, 128>}, {pipeline_mode = #tpu.pipeline_mode<synchronous>, transform_indices = @transform_6, window_bounds = array<i64: 128, 128>}, {pipeline_mode = #tpu.pipeline_mode<synchronous>, transform_indices = @transform_7, window_bounds = array<i64: 1, 128>}, {transform_indices = @transform_8, window_bounds = array<i64: 16, 128>}]} {
    %c0_i32 = arith.constant 0 : i32
    %0 = arith.cmpi eq, %arg1, %c0_i32 : i32
    %1 = arith.extui %0 : i1 to i32
    %c0_i32_0 = arith.constant 0 : i32
    %2 = arith.cmpi ne, %1, %c0_i32_0 : i32
    scf.if %2 {
      %cst_20 = arith.constant 0.000000e+00 : f32
      %29 = vector.broadcast %cst_20 : f32 to vector<16x128xf32>
      %c0_21 = arith.constant 0 : index
      %c0_22 = arith.constant 0 : index
      %30 = vector.load %arg11[%c0_21, %c0_22] : memref<16x128xf32, #tpu.memory_space<vmem>>, vector<16x128xf32>
      tpu.vector_store %arg11[%c0_21, %c0_22], %29 {strides = array<i32>} : memref<16x128xf32, #tpu.memory_space<vmem>>, vector<16x128xf32>,
    } else {
    }
    %c0 = arith.constant 0 : index
    %c0_1 = arith.constant 0 : index
    %3 = vector.load %arg2[%c0, %c0_1] : memref<16x128xbf16, #tpu.memory_space<vmem>>, vector<16x128xbf16>
    %c0_2 = arith.constant 0 : index
    %c0_3 = arith.constant 0 : index
    %4 = vector.load %arg4[%c0_2, %c0_3] : memref<128x128xbf16, #tpu.memory_space<vmem>>, vector<128x128xbf16>
    %cst = arith.constant dense<0.000000e+00> : vector<16x128xf32>
    %5 = tpu.matmul %3, %4, %cst {dimension_numbers = #tpu.dot_dimension_numbers<[1], [0], [0], [1], [0, 0, 1, 1], [], []>} : vector<16x128xbf16>, vector<128x128xbf16>, vector<16x128xf32> -> vector<16x128xf32>
    %c0_4 = arith.constant 0 : index
    %c0_5 = arith.constant 0 : index
    %6 = vector.load %arg3[%c0_4, %c0_5] : memref<16x128xbf16, #tpu.memory_space<vmem>>, vector<16x128xbf16>
    %7 = arith.extf %6 : vector<16x128xbf16> to vector<16x128xf32>
    %8 = arith.addf %5, %7 : vector<16x128xf32>
    %c0_6 = arith.constant 0 : index
    %c0_7 = arith.constant 0 : index
    %9 = vector.load %arg5[%c0_6, %c0_7] : memref<1x128xf32, #tpu.memory_space<vmem>>, vector<1x128xf32>
    %10 = vector.broadcast %9 : vector<1x128xf32> to vector<16x128xf32>
    %11 = arith.addf %8, %10 : vector<16x128xf32>
    %cst_8 = arith.constant 5.000000e-01 : f32
    %12 = vector.broadcast %cst_8 : f32 to vector<16x128xf32>
    %13 = arith.mulf %12, %11 : vector<16x128xf32>
    %cst_9 = arith.constant 0.707106769 : f32
    %14 = vector.broadcast %cst_9 : f32 to vector<16x128xf32>
    %15 = arith.mulf %11, %14 : vector<16x128xf32>
    %16 = math.erf %15 : vector<16x128xf32>
    %cst_10 = arith.constant 1.000000e+00 : f32
    %17 = vector.broadcast %cst_10 : f32 to vector<16x128xf32>
    %18 = arith.addf %17, %16 : vector<16x128xf32>
    %19 = arith.mulf %13, %18 : vector<16x128xf32>
    %c0_11 = arith.constant 0 : index
    %c0_12 = arith.constant 0 : index
    %20 = vector.load %arg11[%c0_11, %c0_12] : memref<16x128xf32, #tpu.memory_space<vmem>>, vector<16x128xf32>
    %21 = arith.truncf %19 : vector<16x128xf32> to vector<16x128xbf16>
    %c0_13 = arith.constant 0 : index
    %c0_14 = arith.constant 0 : index
    %22 = vector.load %arg6[%c0_13, %c0_14] : memref<128x128xbf16, #tpu.memory_space<vmem>>, vector<128x128xbf16>
    %cst_15 = arith.constant dense<0.000000e+00> : vector<16x128xf32>
    %23 = tpu.matmul %21, %22, %cst_15 {dimension_numbers = #tpu.dot_dimension_numbers<[1], [0], [0], [1], [0, 0, 1, 1], [], []>} : vector<16x128xbf16>, vector<128x128xbf16>, vector<16x128xf32> -> vector<16x128xf32>
    %24 = arith.addf %20, %23 : vector<16x128xf32>
    %c0_16 = arith.constant 0 : index
    %c0_17 = arith.constant 0 : index
    %25 = vector.load %arg11[%c0_16, %c0_17] : memref<16x128xf32, #tpu.memory_space<vmem>>, vector<16x128xf32>
    tpu.vector_store %arg11[%c0_16, %c0_17], %24 {strides = array<i32>} : memref<16x128xf32, #tpu.memory_space<vmem>>, vector<16x128xf32>,
    %c0_i32_18 = arith.constant 0 : i32
    %26 = arith.cmpi eq, %arg1, %c0_i32_18 : i32
    %27 = arith.extui %26 : i1 to i32
    %c0_i32_19 = arith.constant 0 : i32
    %28 = arith.cmpi ne, %27, %c0_i32_19 : i32
    scf.if %28 {
      %c0_20 = arith.constant 0 : index
      %c0_21 = arith.constant 0 : index
      %29 = vector.load %arg11[%c0_20, %c0_21] : memref<16x128xf32, #tpu.memory_space<vmem>>, vector<16x128xf32>
      %c0_22 = arith.constant 0 : index
      %c0_23 = arith.constant 0 : index
      %30 = vector.load %arg7[%c0_22, %c0_23] : memref<1x128xf32, #tpu.memory_space<vmem>>, vector<1x128xf32>
      %31 = vector.broadcast %30 : vector<1x128xf32> to vector<16x128xf32>
      %32 = arith.addf %29, %31 : vector<16x128xf32>
      %cst_24 = arith.constant 5.000000e-01 : f32
      %33 = vector.broadcast %cst_24 : f32 to vector<16x128xf32>
      %34 = arith.mulf %33, %32 : vector<16x128xf32>
      %cst_25 = arith.constant 0.707106769 : f32
      %35 = vector.broadcast %cst_25 : f32 to vector<16x128xf32>
      %36 = arith.mulf %32, %35 : vector<16x128xf32>
      %37 = math.erf %36 : vector<16x128xf32>
      %cst_26 = arith.constant 1.000000e+00 : f32
      %38 = vector.broadcast %cst_26 : f32 to vector<16x128xf32>
      %39 = arith.addf %38, %37 : vector<16x128xf32>
      %40 = arith.mulf %34, %39 : vector<16x128xf32>
      %41 = arith.truncf %40 : vector<16x128xf32> to vector<16x128xbf16>
      %c0_27 = arith.constant 0 : index
      %c0_28 = arith.constant 0 : index
      %42 = vector.load %arg8[%c0_27, %c0_28] : memref<128x128xbf16, #tpu.memory_space<vmem>>, vector<128x128xbf16>
      %cst_29 = arith.constant dense<0.000000e+00> : vector<16x128xf32>
      %43 = tpu.matmul %41, %42, %cst_29 {dimension_numbers = #tpu.dot_dimension_numbers<[1], [0], [0], [1], [0, 0, 1, 1], [], []>} : vector<16x128xbf16>, vector<128x128xbf16>, vector<16x128xf32> -> vector<16x128xf32>
      %c0_30 = arith.constant 0 : index
      %c0_31 = arith.constant 0 : index
      %44 = vector.load %arg9[%c0_30, %c0_31] : memref<1x128xf32, #tpu.memory_space<vmem>>, vector<1x128xf32>
      %45 = vector.broadcast %44 : vector<1x128xf32> to vector<16x128xf32>
      %46 = arith.addf %43, %45 : vector<16x128xf32>
      %c0_32 = arith.constant 0 : index
      %c0_33 = arith.constant 0 : index
      %47 = vector.load %arg10[%c0_32, %c0_33] : memref<16x128xf32, #tpu.memory_space<vmem>>, vector<16x128xf32>
      tpu.vector_store %arg10[%c0_32, %c0_33], %46 {strides = array<i32>} : memref<16x128xf32, #tpu.memory_space<vmem>>, vector<16x128xf32>,
    } else {
    }
    return
  }
  func.func @transform_0(%arg0: i32, %arg1: i32) -> (i32, i32) {
    %c0_i32 = arith.constant 0 : i32
    %c0_i32_0 = arith.constant 0 : i32
    return %arg0, %c0_i32 : i32, i32
  }
  func.func @transform_1(%arg0: i32, %arg1: i32) -> (i32, i32) {
    %c0_i32 = arith.constant 0 : i32
    return %arg0, %arg1 : i32, i32
  }
  func.func @transform_2(%arg0: i32, %arg1: i32) -> (i32, i32) {
    %c0_i32 = arith.constant 0 : i32
    %c0_i32_0 = arith.constant 0 : i32
    return %c0_i32, %arg1 : i32, i32
  }
  func.func @transform_3(%arg0: i32, %arg1: i32) -> (i32, i32) {
    %c0_i32 = arith.constant 0 : i32
    %c0_i32_0 = arith.constant 0 : i32
    return %c0_i32, %arg1 : i32, i32
  }
  func.func @transform_4(%arg0: i32, %arg1: i32) -> (i32, i32) {
    %c0_i32 = arith.constant 0 : i32
    %c0_i32_0 = arith.constant 0 : i32
    return %arg1, %c0_i32 : i32, i32
  }
  func.func @transform_5(%arg0: i32, %arg1: i32) -> (i32, i32) {
    %c0_i32 = arith.constant 0 : i32
    %c0_i32_0 = arith.constant 0 : i32
    %c0_i32_1 = arith.constant 0 : i32
    return %c0_i32, %c0_i32_0 : i32, i32
  }
  func.func @transform_6(%arg0: i32, %arg1: i32) -> (i32, i32) {
    %c0_i32 = arith.constant 0 : i32
    %c0_i32_0 = arith.constant 0 : i32
    %c0_i32_1 = arith.constant 0 : i32
    return %c0_i32, %c0_i32_0 : i32, i32
  }
  func.func @transform_7(%arg0: i32, %arg1: i32) -> (i32, i32) {
    %c0_i32 = arith.constant 0 : i32
    %c0_i32_0 = arith.constant 0 : i32
    %c0_i32_1 = arith.constant 0 : i32
    return %c0_i32, %c0_i32_0 : i32, i32
  }
  func.func @transform_8(%arg0: i32, %arg1: i32) -> (i32, i32) {
    %c0_i32 = arith.constant 0 : i32
    %c0_i32_0 = arith.constant 0 : i32
    return %arg0, %c0_i32 : i32, i32
  }
}

module attributes {stable_mosaic.version = 11 : i64} {
  func.func @simple_mlp_kernel(%arg0: i32, %arg1: i32, %arg2: memref<16x128xbf16, #tpu.memory_space<vmem>>, %arg3: memref<16x128xbf16, #tpu.memory_space<vmem>>, %arg4: memref<128x128xbf16, #tpu.memory_space<vmem>>, %arg5: memref<1x128xf32, #tpu.memory_space<vmem>>, %arg6: memref<128x128xbf16, #tpu.memory_space<vmem>>, %arg7: memref<1x128xf32, #tpu.memory_space<vmem>>, %arg8: memref<128x128xbf16, #tpu.memory_space<vmem>>, %arg9: memref<1x128xf32, #tpu.memory_space<vmem>>, %arg10: memref<16x128xf32, #tpu.memory_space<vmem>>, %arg11: memref<16x128xf32, #tpu.memory_space<vmem>>) attributes {dimension_semantics = [#tpu.dimension_semantics<parallel>, #tpu.dimension_semantics<arbitrary>], iteration_bounds = array<i64: 1, 1>, scalar_prefetch = 0 : i64, scratch_operands = 1 : i64, tpu.core_type = #tpu.core_type<tc>, window_params = [{transform_indices = @transform_0, window_bounds = array<i64: 16, 128>}, {transform_indices = @transform_1, window_bounds = array<i64: 16, 128>}, {transform_indices = @transform_2, window_bounds = array<i64: 128, 128>}, {transform_indices = @transform_3, window_bounds = array<i64: 1, 128>}, {transform_indices = @transform_4, window_bounds = array<i64: 128, 128>}, {pipeline_mode = #tpu.pipeline_mode<synchronous>, transform_indices = @transform_5, window_bounds = array<i64: 1, 128>}, {pipeline_mode = #tpu.pipeline_mode<synchronous>, transform_indices = @transform_6, window_bounds = array<i64: 128, 128>}, {pipeline_mode = #tpu.pipeline_mode<synchronous>, transform_indices = @transform_7, window_bounds = array<i64: 1, 128>}, {transform_indices = @transform_8, window_bounds = array<i64: 16, 128>}]} {
    %c0_i32 = arith.constant 0 : i32
    %0 = arith.cmpi eq, %arg1, %c0_i32 : i32
    %1 = arith.extui %0 : i1 to i32
    %c0_i32_0 = arith.constant 0 : i32
    %2 = arith.cmpi ne, %1, %c0_i32_0 : i32
    scf.if %2 {
      %cst_20 = arith.constant 0.000000e+00 : f32
      %29 = vector.broadcast %cst_20 : f32 to vector<16x128xf32>
      %c0_21 = arith.constant 0 : index
      %c0_22 = arith.constant 0 : index
      %30 = vector.load %arg11[%c0_21, %c0_22] : memref<16x128xf32, #tpu.memory_space<vmem>>, vector<16x128xf32>
      tpu.vector_store %arg11[%c0_21, %c0_22], %29 {strides = array<i32>} : memref<16x128xf32, #tpu.memory_space<vmem>>, vector<16x128xf32>,
    } else {
    }
    %c0 = arith.constant 0 : index
    %c0_1 = arith.constant 0 : index
    %3 = vector.load %arg2[%c0, %c0_1] : memref<16x128xbf16, #tpu.memory_space<vmem>>, vector<16x128xbf16>
    %c0_2 = arith.constant 0 : index
    %c0_3 = arith.constant 0 : index
    %4 = vector.load %arg4[%c0_2, %c0_3] : memref<128x128xbf16, #tpu.memory_space<vmem>>, vector<128x128xbf16>
    %cst = arith.constant dense<0.000000e+00> : vector<16x128xf32>
    %5 = tpu.matmul %3, %4, %cst {dimension_numbers = #tpu.dot_dimension_numbers<[1], [0], [0], [1], [0, 0, 1, 1], [], []>} : vector<16x128xbf16>, vector<128x128xbf16>, vector<16x128xf32> -> vector<16x128xf32>
    %c0_4 = arith.constant 0 : index
    %c0_5 = arith.constant 0 : index
    %6 = vector.load %arg3[%c0_4, %c0_5] : memref<16x128xbf16, #tpu.memory_space<vmem>>, vector<16x128xbf16>
    %7 = arith.extf %6 : vector<16x128xbf16> to vector<16x128xf32>
    %8 = arith.addf %5, %7 : vector<16x128xf32>
    %c0_6 = arith.constant 0 : index
    %c0_7 = arith.constant 0 : index
    %9 = vector.load %arg5[%c0_6, %c0_7] : memref<1x128xf32, #tpu.memory_space<vmem>>, vector<1x128xf32>
    %10 = vector.broadcast %9 : vector<1x128xf32> to vector<16x128xf32>
    %11 = arith.addf %8, %10 : vector<16x128xf32>
    %cst_8 = arith.constant 5.000000e-01 : f32
    %12 = vector.broadcast %cst_8 : f32 to vector<16x128xf32>
    %13 = arith.mulf %12, %11 : vector<16x128xf32>
    %cst_9 = arith.constant 0.707106769 : f32
    %14 = vector.broadcast %cst_9 : f32 to vector<16x128xf32>
    %15 = arith.mulf %11, %14 : vector<16x128xf32>
    %16 = math.erf %15 : vector<16x128xf32>
    %cst_10 = arith.constant 1.000000e+00 : f32
    %17 = vector.broadcast %cst_10 : f32 to vector<16x128xf32>
    %18 = arith.addf %17, %16 : vector<16x128xf32>
    %19 = arith.mulf %13, %18 : vector<16x128xf32>
    %c0_11 = arith.constant 0 : index
    %c0_12 = arith.constant 0 : index
    %20 = vector.load %arg11[%c0_11, %c0_12] : memref<16x128xf32, #tpu.memory_space<vmem>>, vector<16x128xf32>
    %21 = arith.truncf %19 : vector<16x128xf32> to vector<16x128xbf16>
    %c0_13 = arith.constant 0 : index
    %c0_14 = arith.constant 0 : index
    %22 = vector.load %arg6[%c0_13, %c0_14] : memref<128x128xbf16, #tpu.memory_space<vmem>>, vector<128x128xbf16>
    %cst_15 = arith.constant dense<0.000000e+00> : vector<16x128xf32>
    %23 = tpu.matmul %21, %22, %cst_15 {dimension_numbers = #tpu.dot_dimension_numbers<[1], [0], [0], [1], [0, 0, 1, 1], [], []>} : vector<16x128xbf16>, vector<128x128xbf16>, vector<16x128xf32> -> vector<16x128xf32>
    %24 = arith.addf %20, %23 : vector<16x128xf32>
    %c0_16 = arith.constant 0 : index
    %c0_17 = arith.constant 0 : index
    %25 = vector.load %arg11[%c0_16, %c0_17] : memref<16x128xf32, #tpu.memory_space<vmem>>, vector<16x128xf32>
    tpu.vector_store %arg11[%c0_16, %c0_17], %24 {strides = array<i32>} : memref<16x128xf32, #tpu.memory_space<vmem>>, vector<16x128xf32>,
    %c0_i32_18 = arith.constant 0 : i32
    %26 = arith.cmpi eq, %arg1, %c0_i32_18 : i32
    %27 = arith.extui %26 : i1 to i32
    %c0_i32_19 = arith.constant 0 : i32
    %28 = arith.cmpi ne, %27, %c0_i32_19 : i32
    scf.if %28 {
      %c0_20 = arith.constant 0 : index
      %c0_21 = arith.constant 0 : index
      %29 = vector.load %arg11[%c0_20, %c0_21] : memref<16x128xf32, #tpu.memory_space<vmem>>, vector<16x128xf32>
      %c0_22 = arith.constant 0 : index
      %c0_23 = arith.constant 0 : index
      %30 = vector.load %arg7[%c0_22, %c0_23] : memref<1x128xf32, #tpu.memory_space<vmem>>, vector<1x128xf32>
      %31 = vector.broadcast %30 : vector<1x128xf32> to vector<16x128xf32>
      %32 = arith.addf %29, %31 : vector<16x128xf32>
      %cst_24 = arith.constant 5.000000e-01 : f32
      %33 = vector.broadcast %cst_24 : f32 to vector<16x128xf32>
      %34 = arith.mulf %33, %32 : vector<16x128xf32>
      %cst_25 = arith.constant 0.707106769 : f32
      %35 = vector.broadcast %cst_25 : f32 to vector<16x128xf32>
      %36 = arith.mulf %32, %35 : vector<16x128xf32>
      %37 = math.erf %36 : vector<16x128xf32>
      %cst_26 = arith.constant 1.000000e+00 : f32
      %38 = vector.broadcast %cst_26 : f32 to vector<16x128xf32>
      %39 = arith.addf %38, %37 : vector<16x128xf32>
      %40 = arith.mulf %34, %39 : vector<16x128xf32>
      %41 = arith.truncf %40 : vector<16x128xf32> to vector<16x128xbf16>
      %c0_27 = arith.constant 0 : index
      %c0_28 = arith.constant 0 : index
      %42 = vector.load %arg8[%c0_27, %c0_28] : memref<128x128xbf16, #tpu.memory_space<vmem>>, vector<128x128xbf16>
      %cst_29 = arith.constant dense<0.000000e+00> : vector<16x128xf32>
      %43 = tpu.matmul %41, %42, %cst_29 {dimension_numbers = #tpu.dot_dimension_numbers<[1], [0], [0], [1], [0, 0, 1, 1], [], []>} : vector<16x128xbf16>, vector<128x128xbf16>, vector<16x128xf32> -> vector<16x128xf32>
      %c0_30 = arith.constant 0 : index
      %c0_31 = arith.constant 0 : index
      %44 = vector.load %arg9[%c0_30, %c0_31] : memref<1x128xf32, #tpu.memory_space<vmem>>, vector<1x128xf32>
      %45 = vector.broadcast %44 : vector<1x128xf32> to vector<16x128xf32>
      %46 = arith.addf %43, %45 : vector<16x128xf32>
      %c0_32 = arith.constant 0 : index
      %c0_33 = arith.constant 0 : index
      %47 = vector.load %arg10[%c0_32, %c0_33] : memref<16x128xf32, #tpu.memory_space<vmem>>, vector<16x128xf32>
      tpu.vector_store %arg10[%c0_32, %c0_33], %46 {strides = array<i32>} : memref<16x128xf32, #tpu.memory_space<vmem>>, vector<16x128xf32>,
    } else {
    }
    return
  }
  func.func @transform_0(%arg0: i32, %arg1: i32) -> (i32, i32) {
    %c0_i32 = arith.constant 0 : i32
    %c0_i32_0 = arith.constant 0 : i32
    return %arg0, %c0_i32 : i32, i32
  }
  func.func @transform_1(%arg0: i32, %arg1: i32) -> (i32, i32) {
    %c0_i32 = arith.constant 0 : i32
    return %arg0, %arg1 : i32, i32
  }
  func.func @transform_2(%arg0: i32, %arg1: i32) -> (i32, i32) {
    %c0_i32 = arith.constant 0 : i32
    %c0_i32_0 = arith.constant 0 : i32
    return %c0_i32, %arg1 : i32, i32
  }
  func.func @transform_3(%arg0: i32, %arg1: i32) -> (i32, i32) {
    %c0_i32 = arith.constant 0 : i32
    %c0_i32_0 = arith.constant 0 : i32
    return %c0_i32, %arg1 : i32, i32
  }
  func.func @transform_4(%arg0: i32, %arg1: i32) -> (i32, i32) {
    %c0_i32 = arith.constant 0 : i32
    %c0_i32_0 = arith.constant 0 : i32
    return %arg1, %c0_i32 : i32, i32
  }
  func.func @transform_5(%arg0: i32, %arg1: i32) -> (i32, i32) {
    %c0_i32 = arith.constant 0 : i32
    %c0_i32_0 = arith.constant 0 : i32
    %c0_i32_1 = arith.constant 0 : i32
    return %c0_i32, %c0_i32_0 : i32, i32
  }
  func.func @transform_6(%arg0: i32, %arg1: i32) -> (i32, i32) {
    %c0_i32 = arith.constant 0 : i32
    %c0_i32_0 = arith.constant 0 : i32
    %c0_i32_1 = arith.constant 0 : i32
    return %c0_i32, %c0_i32_0 : i32, i32
  }
  func.func @transform_7(%arg0: i32, %arg1: i32) -> (i32, i32) {
    %c0_i32 = arith.constant 0 : i32
    %c0_i32_0 = arith.constant 0 : i32
    %c0_i32_1 = arith.constant 0 : i32
    return %c0_i32, %c0_i32_0 : i32, i32
  }
  func.func @transform_8(%arg0: i32, %arg1: i32) -> (i32, i32) {
    %c0_i32 = arith.constant 0 : i32
    %c0_i32_0 = arith.constant 0 : i32
    return %arg0, %c0_i32 : i32, i32
  }
}

</mosaic_0001>

<bundles_post_ra>
// kernel: simple_mlp_forward.1
= control target key start
LH: loop header
LB: loop body
LE: loop exit
PB: predicated region body
PF: predicated region fallthrough
CT: control target
= control target key end

     0   :  { %13 = vsyncpa [#allocation4], 0  ;;  %s791_s0 = inlined_call_operand.vmem [shape: bf16[16,128], index: 0, kind: input, shape index: {}]   ;;  %s792_s1 = inlined_call_operand.vmem [shape: bf16[16,128], index: 1, kind: input, shape index: {}]   ;;  %s793_s2 = inlined_call_operand.vmem [shape: bf16[128,128], index: 2, kind: input, shape index: {}]   ;;  %s794_s3 = inlined_call_operand.vmem [shape: f32[1,128], index: 3, kind: input, shape index: {}]   ;;  %s795_s4 = inlined_call_operand.hbm [shape: bf16[128,128], index: 4, kind: input, shape index: {}]   ;;  %s796_s5 = inlined_call_operand.vmem [shape: f32[1,128], index: 5, kind: input, shape index: {}]   ;;  %s797_s6 = inlined_call_operand.hbm [shape: bf16[128,128], index: 6, kind: input, shape index: {}]   ;;  %s798_s7 = inlined_call_operand.vmem [shape: f32[1,128], index: 7, kind: input, shape index: {}]   ;;  %s799_s8 = inlined_call_operand.vmem [shape: f32[16,128], index: 8, kind: output, shape index: {}]  }
   0x1   :  { %14 = vsyncpa [#allocation6], 0  ;;  %s659_s27 = smov [#allocation3]  }
   0x2   :  { %s28_s28 = sshll.u32 %s659_s27, 4  ;;  %s29_s28 = int_to_ptr.vmem [resolvable:$true] %s28_s28 }
   0x3   :  { %s623_s29 = scalar_lea.vmem %s29_s28, 1024  ;;  %p628_p1 = scmp.lt.s32.totalorder %s29_s28, %s29_s28 }
   0x4   :  { %p624_p0 = scmp.ne.s32.totalorder %s29_s28, %s623_s29  ;;  %p629_p2 = scmp.lt.s32.totalorder %s623_s29, %s623_s29 }
   0x6   :  { %p630_p3 = por %p629_p2, %p628_p1 }
   0x8   :  { %p631_p4 = pnand %p630_p3, %p624_p0 }
   0xa   :  { %634 = shalt.err (!%p631_p4)
}
   0xb   :  { %s660_s30 = smov 64   ;;  %s661_s9 = smov 4  }
   0xc   :  { %34 = dma.hbm_to_vmem [thread:$0]  %s795_s4, 1024, %s29_s28, [#allocation4], %s660_s30, %s660_s30, %s661_s9  }
   0xd   :  { %s662_s12 = smov [#allocation5]  }
   0xe   :  { %s42_s13 = sshll.u32 %s662_s12, 4  ;;  %s43_s13 = int_to_ptr.vmem [resolvable:$true] %s42_s13 }
   0xf   :  { %s643_s14 = scalar_lea.vmem %s43_s13, 1024  ;;  %p648_p6 = scmp.lt.s32.totalorder %s43_s13, %s43_s13 }
  0x10   :  { %p644_p5 = scmp.ne.s32.totalorder %s43_s13, %s643_s14  ;;  %p649_p7 = scmp.lt.s32.totalorder %s643_s14, %s643_s14 }
  0x12   :  { %p650_p8 = por %p649_p7, %p648_p6 }
  0x14   :  { %p651_p9 = pnand %p650_p8, %p644_p5 }
  0x16   :  { %654 = shalt.err (!%p651_p9)
}
  0x17   :  { %48 = dma.hbm_to_vmem [thread:$0]  %s797_s6, 1024, %s43_s13, [#allocation6], %s660_s30, %s660_s30, %s661_s9  }
  0x18   :  { %655 = dma.done.wait [#allocation4], 1024  }
  0x19   :  { %656 = vsyncadd [#allocation4], 4294966272 }
  0x1a   :  { %657 = dma.done.wait [#allocation6], 1024  }
  0x1b   :  { %658 = vsyncadd [#allocation6], 4294966272  ;;  %v663_v0 = vmov 0.0   ;;  %vm664_vm0 = vmmov 0   ;;  %v582_v1 = vld [vmem:[%s793_s2 + $0x38] sm:$0xff]   ;;  %v583_v2 = vld [vmem:[%s793_s2 + $0x30] sm:$0xff]  }
  0x1c   :  { %516 = vmatprep.subr.bf16.mxu0 %v663_v0  ;;  %532 = vmatprep.mubr.msk.bf16.mxu0 %vm664_vm0, %v663_v0  ;;  %v584_v3 = vld [vmem:[%s793_s2 + $0x28] sm:$0xff]   ;;  %v585_v4 = vld [vmem:[%s793_s2 + $0x20] sm:$0xff]   ;;  %v586_v5 = vld [vmem:[%s793_s2 + $0x18] sm:$0xff]  }
  0x1d   :  { %536 = vmatprep.subr.bf16.mxu1 %v663_v0  ;;  %552 = vmatprep.mubr.msk.bf16.mxu1 %vm664_vm0, %v663_v0  ;;  %v587_v6 = vld [vmem:[%s793_s2 + $0x10] sm:$0xff]   ;;  %v588_v7 = vld [vmem:[%s793_s2 + $0x8] sm:$0xff]   ;;  %v589_v8 = vld [vmem:[%s793_s2] sm:$0xff]  }
  0x1e   :  { %517 = vmatpush3.bf16.msra.mxu0 %v582_v1  ;;  %v590_v9 = vld [vmem:[%s791_s0] sm:$0xff]   ;;  %v591_v10 = vld [vmem:[#allocation3 + $0x38] sm:$0xff]   ;;  %v592_v11 = vld [vmem:[#allocation3 + $0x30] sm:$0xff]  }
  0x1f   :  { %518 = vmatprep.subr.bf16.mxu0 %v663_v0  ;;  %537 = vmatpush3.bf16.msra.mxu1 %v591_v10  ;;  %v593_v12 = vld [vmem:[#allocation3 + $0x28] sm:$0xff]   ;;  %v594_v13 = vld [vmem:[#allocation3 + $0x20] sm:$0xff]   ;;  %v595_v14 = vld [vmem:[#allocation3 + $0x18] sm:$0xff]  }
  0x20   :  { %538 = vmatprep.subr.bf16.mxu1 %v663_v0  ;;  %v596_v15 = vld [vmem:[#allocation3 + $0x10] sm:$0xff]   ;;  %v597_v16 = vld [vmem:[#allocation3 + $0x8] sm:$0xff]   ;;  %v598_v17 = vld [vmem:[#allocation3] sm:$0xff]  }
  0x21   :  { %v599_v18 = vld [vmem:[#allocation5 + $0x38] sm:$0xff]   ;;  %v486_v19 = vld [vmem:[%s792_s1] sm:$0xff]   ;;  %v600_v42 = vld [vmem:[#allocation5 + $0x30] sm:$0xff]  }
  0x22   :  { %519 = vmatpush3.bf16.msra.mxu0 %v583_v2  ;;  %v487_v20 = vunpack.c.l.bf16 %v486_v19  ;;  %v466_v22 = vld [vmem:[%s794_s3] ss:$0 sm:$0xff]  ;;  %v488_v24 = vunpack.c.h.bf16 %v486_v19  ;;  %v601_v43 = vld [vmem:[#allocation5 + $0x28] sm:$0xff]   ;;  %v603_v45 = vld [vmem:[#allocation5 + $0x18] sm:$0xff]  }
  0x23   :  { %520 = vmatprep.subr.bf16.mxu0 %v663_v0  ;;  %539 = vmatpush3.bf16.msra.mxu1 %v592_v11  ;;  %v602_v44 = vld [vmem:[#allocation5 + $0x20] sm:$0xff]   ;;  %v604_v46 = vld [vmem:[#allocation5 + $0x10] sm:$0xff]   ;;  %v605_v47 = vld [vmem:[#allocation5 + $0x8] sm:$0xff]  }
  0x24   :  { %540 = vmatprep.subr.bf16.mxu1 %v663_v0  ;;  %v606_v48 = vld [vmem:[#allocation5] sm:$0xff]  }
  0x25   :  { %v475_v49 = vld [vmem:[%s796_s5] ss:$0 sm:$0xff] }
  0x26   :  { %521 = vmatpush3.bf16.msra.mxu0 %v584_v3  ;;  %v476_v3 = vld [vmem:[%s798_s7] ss:$0 sm:$0xff] }
  0x27   :  { %522 = vmatprep.subr.bf16.mxu0 %v663_v0  ;;  %541 = vmatpush3.bf16.msra.mxu1 %v593_v12 }
  0x28   :  { %542 = vmatprep.subr.bf16.mxu1 %v663_v0 }
  0x2a   :  { %523 = vmatpush3.bf16.msra.mxu0 %v585_v4 }
  0x2b   :  { %524 = vmatprep.subr.bf16.mxu0 %v663_v0  ;;  %543 = vmatpush3.bf16.msra.mxu1 %v594_v13 }
  0x2c   :  { %544 = vmatprep.subr.bf16.mxu1 %v663_v0 }
  0x2e   :  { %525 = vmatpush3.bf16.msra.mxu0 %v586_v5 }
  0x2f   :  { %526 = vmatprep.subr.bf16.mxu0 %v663_v0  ;;  %545 = vmatpush3.bf16.msra.mxu1 %v595_v14 }
  0x30   :  { %546 = vmatprep.subr.bf16.mxu1 %v663_v0 }
  0x32   :  { %527 = vmatpush3.bf16.msra.mxu0 %v587_v6 }
  0x33   :  { %528 = vmatprep.subr.bf16.mxu0 %v663_v0  ;;  %547 = vmatpush3.bf16.msra.mxu1 %v596_v15 }
  0x34   :  { %548 = vmatprep.subr.bf16.mxu1 %v663_v0 }
  0x36   :  { %529 = vmatpush3.bf16.msra.mxu0 %v588_v7 }
  0x37   :  { %530 = vmatprep.subr.bf16.mxu0 %v663_v0  ;;  %549 = vmatpush3.bf16.msra.mxu1 %v597_v16 }
  0x38   :  { %550 = vmatprep.subr.bf16.mxu1 %v663_v0 }
  0x3a   :  { %531 = vmatpush3.bf16.msra.mxu0 %v589_v8 }
  0x3b   :  { %556 = vmatprep.subr.bf16.mxu0 %v663_v0  ;;  %551 = vmatpush3.bf16.msra.mxu1 %v598_v17 }
  0x3d   :  { %533 = vmatmul.mubr.bf16.vlgmr.msra.gmra.mxu0 %v590_v9 }
  0x3e   :  { %572 = vmatprep.mubr.msk.bf16.mxu0 %vm664_vm0, %v663_v0  ;;  %557 = vmatpush3.bf16.msra.mxu0 %v599_v18 }
  0x3f   :  { %558 = vmatprep.subr.bf16.mxu0 %v663_v0 }
  0x42   :  { %559 = vmatpush3.bf16.msra.mxu0 %v600_v42 }
  0x43   :  { %560 = vmatprep.subr.bf16.mxu0 %v663_v0 }
  0x46   :  { %561 = vmatpush3.bf16.msra.mxu0 %v601_v43 }
  0x47   :  { %562 = vmatprep.subr.bf16.mxu0 %v663_v0 }
  0x4a   :  { %563 = vmatpush3.bf16.msra.mxu0 %v602_v44 }
  0x4b   :  { %564 = vmatprep.subr.bf16.mxu0 %v663_v0 }
  0x4e   :  { %565 = vmatpush3.bf16.msra.mxu0 %v603_v45 }
  0x4f   :  { %566 = vmatprep.subr.bf16.mxu0 %v663_v0 }
  0x52   :  { %567 = vmatpush3.bf16.msra.mxu0 %v604_v46 }
  0x53   :  { %568 = vmatprep.subr.bf16.mxu0 %v663_v0 }
  0x56   :  { %569 = vmatpush3.bf16.msra.mxu0 %v605_v47 }
  0x57   :  { %570 = vmatprep.subr.bf16.mxu0 %v663_v0 }
  0x5a   :  { %571 = vmatpush3.bf16.msra.mxu0 %v606_v48 }
  0xfd   :  { %v174_v21 = vpop.f32.mrf.mxu0 }
  0xfe   :  { %v175_v23 = vadd.f32 %v487_v20, %v174_v21 }
  0xff   :  { %v534_v25 = vpop.f32.mrf.mxu0 }
 0x100   :  { %v188_v26 = vadd.f32 %v466_v22, %v175_v23 }
 0x101   :  { %v177_v27 = vpop.f32.mrf.mxu0 }
 0x102   :  { %v192_v28 = vmul.f32 0.70710677, %v188_v26  ;;  %v178_v29 = vadd.f32 %v488_v24, %v177_v27  ;;  %v190_v36 = vmul.f32 0.5, %v188_v26 }
 0x103   :  { %v535_v30 = vpop.f32.mrf.mxu0 }
 0x104   :  { %607 = verf.f32 %v192_v28  ;;  %v189_v31 = vadd.f32 %v466_v22, %v178_v29 }
 0x106   :  { %v193_v32 = vmul.f32 0.70710677, %v189_v31  ;;  %v191_v37 = vmul.f32 0.5, %v189_v31 }
 0x108   :  { %609 = verf.f32 %v193_v32 }
 0x111   :  { %v608_v33 = vpop.eup %607 }
 0x112   :  { %v196_v34 = vadd.f32 1.0, %v608_v33 }
 0x114   :  { %v198_v39 = vmul.f32 %v196_v34, %v190_v36 }
 0x115   :  { %v610_v35 = vpop.eup %609 }
 0x116   :  { %v197_v38 = vadd.f32 1.0, %v610_v35 }
 0x118   :  { %v199_v40 = vmul.f32 %v197_v38, %v191_v37 }
 0x11a   :  { %v202_v41 = vpack.c.bf16 %v199_v40, %v198_v39 }
 0x11c   :  { %553 = vmatmul.mubr.bf16.vlgmr.msra.gmra.mxu1 %v202_v41 }
 0x1dc   :  { %v301_v50 = vpop.f32.mrf.mxu1 }
 0x1dd   :  { %v324_v51 = vadd.f32 %v475_v49, %v301_v50 }
 0x1de   :  { %v554_v52 = vpop.f32.mrf.mxu1 }
 0x1df   :  { %v328_v53 = vmul.f32 0.70710677, %v324_v51  ;;  %v326_v61 = vmul.f32 0.5, %v324_v51 }
 0x1e0   :  { %v304_v54 = vpop.f32.mrf.mxu1 }
 0x1e1   :  { %611 = verf.f32 %v328_v53  ;;  %v325_v55 = vadd.f32 %v475_v49, %v304_v54 }
 0x1e2   :  { %v555_v56 = vpop.f32.mrf.mxu1 }
 0x1e3   :  { %v329_v57 = vmul.f32 0.70710677, %v325_v55  ;;  %v327_v62 = vmul.f32 0.5, %v325_v55 }
 0x1e5   :  { %613 = verf.f32 %v329_v57 }
 0x1ee   :  { %v612_v58 = vpop.eup %611 }
 0x1ef   :  { %v332_v59 = vadd.f32 1.0, %v612_v58 }
 0x1f1   :  { %v334_v0 = vmul.f32 %v332_v59, %v326_v61 }
 0x1f2   :  { %v614_v60 = vpop.eup %613 }
 0x1f3   :  { %v333_v63 = vadd.f32 1.0, %v614_v60 }
 0x1f5   :  { %v335_v1 = vmul.f32 %v333_v63, %v327_v62 }
 0x1f7   :  { %v336_v2 = vpack.c.bf16 %v335_v1, %v334_v0 }
 0x1f9   :  { %573 = vmatmul.mubr.bf16.vlgmr.msra.gmra.mxu0 %v336_v2 }
 0x2b9   :  { %v442_v4 = vpop.f32.mrf.mxu0 }
 0x2ba   :  { %v443_v5 = vadd.f32 %v476_v3, %v442_v4 }
 0x2bb   :  { %v574_v6 = vpop.f32.mrf.mxu0 }
 0x2bc   :  { %449 = vst [vmem:[%s799_s8] sm:$0xff] %v443_v5 }
 0x2bd   :  { %v445_v7 = vpop.f32.mrf.mxu0 }
 0x2be   :  { %v446_v8 = vadd.f32 %v476_v3, %v445_v7 }
 0x2bf   :  { %v575_v9 = vpop.f32.mrf.mxu0 }
 0x2c0   :  { %450 = vst [vmem:[%s799_s8 + $0x8] sm:$0xff] %v446_v8 }
 0x2c1   :  { %455 = vsyncpa [#allocation4], 1 }
 0x2c2   :  { %456 = vsyncpa [#allocation6], 1 }

// kernel: simple_mlp_forward.1
= control target key start
LH: loop header
LB: loop body
LE: loop exit
PB: predicated region body
PF: predicated region fallthrough
CT: control target
= control target key end

     0   :  { %13 = vsyncpa [#allocation4], 0  ;;  %s791_s0 = inlined_call_operand.vmem [shape: bf16[16,128], index: 0, kind: input, shape index: {}]   ;;  %s792_s1 = inlined_call_operand.vmem [shape: bf16[16,128], index: 1, kind: input, shape index: {}]   ;;  %s793_s2 = inlined_call_operand.vmem [shape: bf16[128,128], index: 2, kind: input, shape index: {}]   ;;  %s794_s3 = inlined_call_operand.vmem [shape: f32[1,128], index: 3, kind: input, shape index: {}]   ;;  %s795_s4 = inlined_call_operand.hbm [shape: bf16[128,128], index: 4, kind: input, shape index: {}]   ;;  %s796_s5 = inlined_call_operand.vmem [shape: f32[1,128], index: 5, kind: input, shape index: {}]   ;;  %s797_s6 = inlined_call_operand.hbm [shape: bf16[128,128], index: 6, kind: input, shape index: {}]   ;;  %s798_s7 = inlined_call_operand.vmem [shape: f32[1,128], index: 7, kind: input, shape index: {}]   ;;  %s799_s8 = inlined_call_operand.vmem [shape: f32[16,128], index: 8, kind: output, shape index: {}]  }
   0x1   :  { %14 = vsyncpa [#allocation6], 0  ;;  %s659_s27 = smov [#allocation3]  }
   0x2   :  { %s28_s28 = sshll.u32 %s659_s27, 4  ;;  %s29_s28 = int_to_ptr.vmem [resolvable:$true] %s28_s28 }
   0x3   :  { %s623_s29 = scalar_lea.vmem %s29_s28, 1024  ;;  %p628_p1 = scmp.lt.s32.totalorder %s29_s28, %s29_s28 }
   0x4   :  { %p624_p0 = scmp.ne.s32.totalorder %s29_s28, %s623_s29  ;;  %p629_p2 = scmp.lt.s32.totalorder %s623_s29, %s623_s29 }
   0x6   :  { %p630_p3 = por %p629_p2, %p628_p1 }
   0x8   :  { %p631_p4 = pnand %p630_p3, %p624_p0 }
   0xa   :  { %634 = shalt.err (!%p631_p4)
}
   0xb   :  { %s660_s30 = smov 64   ;;  %s661_s9 = smov 4  }
   0xc   :  { %34 = dma.hbm_to_vmem [thread:$0]  %s795_s4, 1024, %s29_s28, [#allocation4], %s660_s30, %s660_s30, %s661_s9  }
   0xd   :  { %s662_s12 = smov [#allocation5]  }
   0xe   :  { %s42_s13 = sshll.u32 %s662_s12, 4  ;;  %s43_s13 = int_to_ptr.vmem [resolvable:$true] %s42_s13 }
   0xf   :  { %s643_s14 = scalar_lea.vmem %s43_s13, 1024  ;;  %p648_p6 = scmp.lt.s32.totalorder %s43_s13, %s43_s13 }
  0x10   :  { %p644_p5 = scmp.ne.s32.totalorder %s43_s13, %s643_s14  ;;  %p649_p7 = scmp.lt.s32.totalorder %s643_s14, %s643_s14 }
  0x12   :  { %p650_p8 = por %p649_p7, %p648_p6 }
  0x14   :  { %p651_p9 = pnand %p650_p8, %p644_p5 }
  0x16   :  { %654 = shalt.err (!%p651_p9)
}
  0x17   :  { %48 = dma.hbm_to_vmem [thread:$0]  %s797_s6, 1024, %s43_s13, [#allocation6], %s660_s30, %s660_s30, %s661_s9  }
  0x18   :  { %655 = dma.done.wait [#allocation4], 1024  }
  0x19   :  { %656 = vsyncadd [#allocation4], 4294966272 }
  0x1a   :  { %657 = dma.done.wait [#allocation6], 1024  }
  0x1b   :  { %658 = vsyncadd [#allocation6], 4294966272  ;;  %v663_v0 = vmov 0.0   ;;  %vm664_vm0 = vmmov 0   ;;  %v582_v1 = vld [vmem:[%s793_s2 + $0x38] sm:$0xff]   ;;  %v583_v2 = vld [vmem:[%s793_s2 + $0x30] sm:$0xff]  }
  0x1c   :  { %516 = vmatprep.subr.bf16.mxu0 %v663_v0  ;;  %532 = vmatprep.mubr.msk.bf16.mxu0 %vm664_vm0, %v663_v0  ;;  %v584_v3 = vld [vmem:[%s793_s2 + $0x28] sm:$0xff]   ;;  %v585_v4 = vld [vmem:[%s793_s2 + $0x20] sm:$0xff]   ;;  %v586_v5 = vld [vmem:[%s793_s2 + $0x18] sm:$0xff]  }
  0x1d   :  { %536 = vmatprep.subr.bf16.mxu1 %v663_v0  ;;  %552 = vmatprep.mubr.msk.bf16.mxu1 %vm664_vm0, %v663_v0  ;;  %v587_v6 = vld [vmem:[%s793_s2 + $0x10] sm:$0xff]   ;;  %v588_v7 = vld [vmem:[%s793_s2 + $0x8] sm:$0xff]   ;;  %v589_v8 = vld [vmem:[%s793_s2] sm:$0xff]  }
  0x1e   :  { %517 = vmatpush3.bf16.msra.mxu0 %v582_v1  ;;  %v590_v9 = vld [vmem:[%s791_s0] sm:$0xff]   ;;  %v591_v10 = vld [vmem:[#allocation3 + $0x38] sm:$0xff]   ;;  %v592_v11 = vld [vmem:[#allocation3 + $0x30] sm:$0xff]  }
  0x1f   :  { %518 = vmatprep.subr.bf16.mxu0 %v663_v0  ;;  %537 = vmatpush3.bf16.msra.mxu1 %v591_v10  ;;  %v593_v12 = vld [vmem:[#allocation3 + $0x28] sm:$0xff]   ;;  %v594_v13 = vld [vmem:[#allocation3 + $0x20] sm:$0xff]   ;;  %v595_v14 = vld [vmem:[#allocation3 + $0x18] sm:$0xff]  }
  0x20   :  { %538 = vmatprep.subr.bf16.mxu1 %v663_v0  ;;  %v596_v15 = vld [vmem:[#allocation3 + $0x10] sm:$0xff]   ;;  %v597_v16 = vld [vmem:[#allocation3 + $0x8] sm:$0xff]   ;;  %v598_v17 = vld [vmem:[#allocation3] sm:$0xff]  }
  0x21   :  { %v599_v18 = vld [vmem:[#allocation5 + $0x38] sm:$0xff]   ;;  %v486_v19 = vld [vmem:[%s792_s1] sm:$0xff]   ;;  %v600_v42 = vld [vmem:[#allocation5 + $0x30] sm:$0xff]  }
  0x22   :  { %519 = vmatpush3.bf16.msra.mxu0 %v583_v2  ;;  %v487_v20 = vunpack.c.l.bf16 %v486_v19  ;;  %v466_v22 = vld [vmem:[%s794_s3] ss:$0 sm:$0xff]  ;;  %v488_v24 = vunpack.c.h.bf16 %v486_v19  ;;  %v601_v43 = vld [vmem:[#allocation5 + $0x28] sm:$0xff]   ;;  %v603_v45 = vld [vmem:[#allocation5 + $0x18] sm:$0xff]  }
  0x23   :  { %520 = vmatprep.subr.bf16.mxu0 %v663_v0  ;;  %539 = vmatpush3.bf16.msra.mxu1 %v592_v11  ;;  %v602_v44 = vld [vmem:[#allocation5 + $0x20] sm:$0xff]   ;;  %v604_v46 = vld [vmem:[#allocation5 + $0x10] sm:$0xff]   ;;  %v605_v47 = vld [vmem:[#allocation5 + $0x8] sm:$0xff]  }
  0x24   :  { %540 = vmatprep.subr.bf16.mxu1 %v663_v0  ;;  %v606_v48 = vld [vmem:[#allocation5] sm:$0xff]  }
  0x25   :  { %v475_v49 = vld [vmem:[%s796_s5] ss:$0 sm:$0xff] }
  0x26   :  { %521 = vmatpush3.bf16.msra.mxu0 %v584_v3  ;;  %v476_v3 = vld [vmem:[%s798_s7] ss:$0 sm:$0xff] }
  0x27   :  { %522 = vmatprep.subr.bf16.mxu0 %v663_v0  ;;  %541 = vmatpush3.bf16.msra.mxu1 %v593_v12 }
  0x28   :  { %542 = vmatprep.subr.bf16.mxu1 %v663_v0 }
  0x2a   :  { %523 = vmatpush3.bf16.msra.mxu0 %v585_v4 }
  0x2b   :  { %524 = vmatprep.subr.bf16.mxu0 %v663_v0  ;;  %543 = vmatpush3.bf16.msra.mxu1 %v594_v13 }
  0x2c   :  { %544 = vmatprep.subr.bf16.mxu1 %v663_v0 }
  0x2e   :  { %525 = vmatpush3.bf16.msra.mxu0 %v586_v5 }
  0x2f   :  { %526 = vmatprep.subr.bf16.mxu0 %v663_v0  ;;  %545 = vmatpush3.bf16.msra.mxu1 %v595_v14 }
  0x30   :  { %546 = vmatprep.subr.bf16.mxu1 %v663_v0 }
  0x32   :  { %527 = vmatpush3.bf16.msra.mxu0 %v587_v6 }
  0x33   :  { %528 = vmatprep.subr.bf16.mxu0 %v663_v0  ;;  %547 = vmatpush3.bf16.msra.mxu1 %v596_v15 }
  0x34   :  { %548 = vmatprep.subr.bf16.mxu1 %v663_v0 }
  0x36   :  { %529 = vmatpush3.bf16.msra.mxu0 %v588_v7 }
  0x37   :  { %530 = vmatprep.subr.bf16.mxu0 %v663_v0  ;;  %549 = vmatpush3.bf16.msra.mxu1 %v597_v16 }
  0x38   :  { %550 = vmatprep.subr.bf16.mxu1 %v663_v0 }
  0x3a   :  { %531 = vmatpush3.bf16.msra.mxu0 %v589_v8 }
  0x3b   :  { %556 = vmatprep.subr.bf16.mxu0 %v663_v0  ;;  %551 = vmatpush3.bf16.msra.mxu1 %v598_v17 }
  0x3d   :  { %533 = vmatmul.mubr.bf16.vlgmr.msra.gmra.mxu0 %v590_v9 }
  0x3e   :  { %572 = vmatprep.mubr.msk.bf16.mxu0 %vm664_vm0, %v663_v0  ;;  %557 = vmatpush3.bf16.msra.mxu0 %v599_v18 }
  0x3f   :  { %558 = vmatprep.subr.bf16.mxu0 %v663_v0 }
  0x42   :  { %559 = vmatpush3.bf16.msra.mxu0 %v600_v42 }
  0x43   :  { %560 = vmatprep.subr.bf16.mxu0 %v663_v0 }
  0x46   :  { %561 = vmatpush3.bf16.msra.mxu0 %v601_v43 }
  0x47   :  { %562 = vmatprep.subr.bf16.mxu0 %v663_v0 }
  0x4a   :  { %563 = vmatpush3.bf16.msra.mxu0 %v602_v44 }
  0x4b   :  { %564 = vmatprep.subr.bf16.mxu0 %v663_v0 }
  0x4e   :  { %565 = vmatpush3.bf16.msra.mxu0 %v603_v45 }
  0x4f   :  { %566 = vmatprep.subr.bf16.mxu0 %v663_v0 }
  0x52   :  { %567 = vmatpush3.bf16.msra.mxu0 %v604_v46 }
  0x53   :  { %568 = vmatprep.subr.bf16.mxu0 %v663_v0 }
  0x56   :  { %569 = vmatpush3.bf16.msra.mxu0 %v605_v47 }
  0x57   :  { %570 = vmatprep.subr.bf16.mxu0 %v663_v0 }
  0x5a   :  { %571 = vmatpush3.bf16.msra.mxu0 %v606_v48 }
  0xfd   :  { %v174_v21 = vpop.f32.mrf.mxu0 }
  0xfe   :  { %v175_v23 = vadd.f32 %v487_v20, %v174_v21 }
  0xff   :  { %v534_v25 = vpop.f32.mrf.mxu0 }
 0x100   :  { %v188_v26 = vadd.f32 %v466_v22, %v175_v23 }
 0x101   :  { %v177_v27 = vpop.f32.mrf.mxu0 }
 0x102   :  { %v192_v28 = vmul.f32 0.70710677, %v188_v26  ;;  %v178_v29 = vadd.f32 %v488_v24, %v177_v27  ;;  %v190_v36 = vmul.f32 0.5, %v188_v26 }
 0x103   :  { %v535_v30 = vpop.f32.mrf.mxu0 }
 0x104   :  { %607 = verf.f32 %v192_v28  ;;  %v189_v31 = vadd.f32 %v466_v22, %v178_v29 }
 0x106   :  { %v193_v32 = vmul.f32 0.70710677, %v189_v31  ;;  %v191_v37 = vmul.f32 0.5, %v189_v31 }
 0x108   :  { %609 = verf.f32 %v193_v32 }
 0x111   :  { %v608_v33 = vpop.eup %607 }
 0x112   :  { %v196_v34 = vadd.f32 1.0, %v608_v33 }
 0x114   :  { %v198_v39 = vmul.f32 %v196_v34, %v190_v36 }
 0x115   :  { %v610_v35 = vpop.eup %609 }
 0x116   :  { %v197_v38 = vadd.f32 1.0, %v610_v35 }
 0x118   :  { %v199_v40 = vmul.f32 %v197_v38, %v191_v37 }
 0x11a   :  { %v202_v41 = vpack.c.bf16 %v199_v40, %v198_v39 }
 0x11c   :  { %553 = vmatmul.mubr.bf16.vlgmr.msra.gmra.mxu1 %v202_v41 }
 0x1dc   :  { %v301_v50 = vpop.f32.mrf.mxu1 }
 0x1dd   :  { %v324_v51 = vadd.f32 %v475_v49, %v301_v50 }
 0x1de   :  { %v554_v52 = vpop.f32.mrf.mxu1 }
 0x1df   :  { %v328_v53 = vmul.f32 0.70710677, %v324_v51  ;;  %v326_v61 = vmul.f32 0.5, %v324_v51 }
 0x1e0   :  { %v304_v54 = vpop.f32.mrf.mxu1 }
 0x1e1   :  { %611 = verf.f32 %v328_v53  ;;  %v325_v55 = vadd.f32 %v475_v49, %v304_v54 }
 0x1e2   :  { %v555_v56 = vpop.f32.mrf.mxu1 }
 0x1e3   :  { %v329_v57 = vmul.f32 0.70710677, %v325_v55  ;;  %v327_v62 = vmul.f32 0.5, %v325_v55 }
 0x1e5   :  { %613 = verf.f32 %v329_v57 }
 0x1ee   :  { %v612_v58 = vpop.eup %611 }
 0x1ef   :  { %v332_v59 = vadd.f32 1.0, %v612_v58 }
 0x1f1   :  { %v334_v0 = vmul.f32 %v332_v59, %v326_v61 }
 0x1f2   :  { %v614_v60 = vpop.eup %613 }
 0x1f3   :  { %v333_v63 = vadd.f32 1.0, %v614_v60 }
 0x1f5   :  { %v335_v1 = vmul.f32 %v333_v63, %v327_v62 }
 0x1f7   :  { %v336_v2 = vpack.c.bf16 %v335_v1, %v334_v0 }
 0x1f9   :  { %573 = vmatmul.mubr.bf16.vlgmr.msra.gmra.mxu0 %v336_v2 }
 0x2b9   :  { %v442_v4 = vpop.f32.mrf.mxu0 }
 0x2ba   :  { %v443_v5 = vadd.f32 %v476_v3, %v442_v4 }
 0x2bb   :  { %v574_v6 = vpop.f32.mrf.mxu0 }
 0x2bc   :  { %449 = vst [vmem:[%s799_s8] sm:$0xff] %v443_v5 }
 0x2bd   :  { %v445_v7 = vpop.f32.mrf.mxu0 }
 0x2be   :  { %v446_v8 = vadd.f32 %v476_v3, %v445_v7 }
 0x2bf   :  { %v575_v9 = vpop.f32.mrf.mxu0 }
 0x2c0   :  { %450 = vst [vmem:[%s799_s8 + $0x8] sm:$0xff] %v446_v8 }
 0x2c1   :  { %455 = vsyncpa [#allocation4], 1 }
 0x2c2   :  { %456 = vsyncpa [#allocation6], 1 }

</bundles_post_ra>
